<compile_context>
chip_gen: v7x
topology: tpu7x:2x2x1
jax: 0.10.0
libtpu: 0.0.40
codegen_flags: <defaults>
</compile_context>

<pallas_src>
import jax
import jax.numpy as jnp
from jax.experimental import pallas as pl
from jax.experimental.pallas import tpu as pltpu

HIDDEN = 30
_LANE = 128


def _round_up(x, m):
    return (x + m - 1) // m * m


def _mlp_kernel(x_ref, w1_ref, b1_ref, w2_ref, b2_ref, o_ref):
    # Hidden layer: [TB, Df] @ [Df, Hf] (MXU, f32 acc) + bias, ReLU (VPU).
    h = jnp.dot(x_ref[...], w1_ref[...], preferred_element_type=jnp.float32)
    h = jnp.maximum(h + b1_ref[...], 0.0)
    # Output layer: [TB, Hf] @ [Hf, Af] (MXU, f32 acc) + bias; epilogue in f32.
    q = jnp.dot(h.astype(w2_ref.dtype), w2_ref[...],
                preferred_element_type=jnp.float32)
    o_ref[...] = (q + b2_ref[...]).astype(o_ref.dtype)


def _fold_params(w1, b1, w2, b2, fold, dtype):
    """Block-diagonal weights/biases for the batch-fold layout (tiny, built once)."""
    d_in, hidden = w1.shape
    actions = w2.shape[1]
    if fold == 1:
        w1f, w2f, b1f, b2f = w1, w2, b1, b2
    else:
        eye = jnp.eye(fold, dtype=w1.dtype)
        w1f = jnp.einsum("fg,dh->fdgh", eye, w1).reshape(fold * d_in, fold * hidden)
        w2f = jnp.einsum("fg,ha->fhga", eye, w2).reshape(fold * hidden, fold * actions)
        b1f = jnp.tile(b1, fold)
        b2f = jnp.tile(b2, fold)
    return (w1f.astype(dtype), b1f.reshape(1, -1).astype(jnp.float32),
            w2f.astype(dtype), b2f.reshape(1, -1).astype(jnp.float32))


def neural_network_forward(x, w1, b1, w2, b2, *,
                           batch_tile=16384, fold=8,
                           compute_dtype=jnp.float32):
    """Forward pass of the 2-layer Q-network.

    x:  [B, input_size]      w1: [input_size, 30]   b1: [30]
    w2: [30, actions_num]    b2: [actions_num]
    Returns [B, actions_num] float32.

    `fold` (power of two) batch rows are packed into the lane axis; it is
    automatically reduced to the largest power of two dividing B.  For the
    full HBM-bandwidth win of compute_dtype=bfloat16, pass x already in bf16.
    """
    B, d_in = x.shape
    hidden = w1.shape[1]
    actions = w2.shape[1]
    assert w1.shape == (d_in, hidden) and w2.shape == (hidden, actions)
    assert b1.shape == (hidden,) and b2.shape == (actions,)
    assert fold >= 1 and (fold & (fold - 1)) == 0, "fold must be a power of two"

    cd = jnp.dtype(compute_dtype)
    itemsize = cd.itemsize
    sub = 8 * max(1, 4 // itemsize)          # sublane quantum: 8 (f32) / 16 (bf16)

    # Largest power-of-two fold that divides B (F=1 fallback keeps semantics).
    F = fold
    while F > 1 and B % F != 0:
        F //= 2

    Bf, Df, Hf, Af = B // F, F * d_in, F * hidden, F * actions

    # Free row-major reshape (bitcast view, no HBM copy when dtype matches).
    xf = x.reshape(Bf, Df).astype(cd)
    w1f, b1f, w2f, b2f = _fold_params(w1, b1, w2, b2, F, cd)

    # --- Tile selection (folded rows per grid step) --------------------------
    # Budget the double-buffered streaming blocks + intermediates to ~16 MiB so
    # the working set fits every generation (v7x: 64 MiB physical VMEM; v5e's
    # 16 MiB default scoped limit is raised via vmem_limit_bytes below).
    x_row = _round_up(Df, _LANE) * itemsize        # x block bytes per folded row
    out_row = _round_up(Af, _LANE) * 4             # f32 output block
    h_row = _round_up(Hf, _LANE) * 4               # f32 hidden intermediate
    w_bytes = 2 * itemsize * (Df * _round_up(Hf, _LANE) + Hf * _round_up(Af, _LANE))
    row_bytes = 2 * x_row + 2 * out_row + h_row + out_row
    budget = 16 * 1024 * 1024 - w_bytes - (1 << 20)
    tb_vmem = max(sub, budget // row_bytes)

    TBf = min(max(1, batch_tile // F), tb_vmem)
    if TBf < Bf:
        TBf = max(sub, (TBf // sub) * sub)         # multiple of sublane quantum
    if TBf >= Bf:
        TBf = Bf                                   # single step, exact block
    grid = (pl.cdiv(Bf, TBf),)                     # ragged last block handled by Pallas

    n_rows = grid[0] * TBf
    flops = 2 * n_rows * (Df * Hf + Hf * Af)
    bytes_accessed = (Bf * Df * itemsize           # x streamed in
                      + Bf * Af * 4                # q streamed out (f32)
                      + (Df * Hf + Hf * Af) * itemsize
                      + (Hf + Af) * 4)

    out = pl.pallas_call(
        _mlp_kernel,
        out_shape=jax.ShapeDtypeStruct((Bf, Af), jnp.float32),
        grid_spec=pltpu.PrefetchScalarGridSpec(
            num_scalar_prefetch=0,
            grid=grid,
            in_specs=[
                pl.BlockSpec((TBf, Df), lambda i: (i, 0)),   # x: per-tile stream
                pl.BlockSpec((Df, Hf), lambda i: (0, 0)),    # w1: VMEM-resident
                pl.BlockSpec((1, Hf), lambda i: (0, 0)),     # b1: VMEM-resident
                pl.BlockSpec((Hf, Af), lambda i: (0, 0)),    # w2: VMEM-resident
                pl.BlockSpec((1, Af), lambda i: (0, 0)),     # b2: VMEM-resident
            ],
            out_specs=pl.BlockSpec((TBf, Af), lambda i: (i, 0)),
        ),
        compiler_params=pltpu.CompilerParams(
            # Batch tiles are independent -> shard across both v7x TCs.
            dimension_semantics=("parallel",),
            # Raise v5e's 16 MiB default scoped limit; <= physical on all gens.
            vmem_limit_bytes=48 * 1024 * 1024,
        ),
        cost_estimate=pl.CostEstimate(
            flops=flops, transcendentals=0, bytes_accessed=bytes_accessed),
    )(xf, w1f, b1f, w2f, b2f)

    # Free row-major reshape back to [B, actions_num].
    return out.reshape(B, actions)


def init_params(key, input_size, actions_num, hidden=HIDDEN):
    """Deterministic init matching nn.Linear's U(-1/sqrt(fan_in), 1/sqrt(fan_in))."""
    k1, k2, k3, k4 = jax.random.split(key, 4)
    lim1 = 1.0 / jnp.sqrt(jnp.float32(input_size))
    lim2 = 1.0 / jnp.sqrt(jnp.float32(hidden))
    w1 = jax.random.uniform(k1, (input_size, hidden), jnp.float32, -lim1, lim1)
    b1 = jax.random.uniform(k2, (hidden,), jnp.float32, -lim1, lim1)
    w2 = jax.random.uniform(k3, (hidden, actions_num), jnp.float32, -lim2, lim2)
    b2 = jax.random.uniform(k4, (actions_num,), jnp.float32, -lim2, lim2)
    return w1, b1, w2, b2


if __name__ == "__main__":
    input_size = 32   # state dimensionality
    actions_num = 4   # number of Q-values

    key = jax.random.PRNGKey(0)
    kx, kp = jax.random.split(key)
    w1, b1, w2, b2 = init_params(kp, input_size, actions_num)

    def ref_fwd(xx):
        # Pure-JAX reference of the forward semantics.
        return jnp.maximum(xx @ w1 + b1, 0.0) @ w2 + b2

    # Small batch exercising the F=8 fold (single grid step), f32 path.
    x16 = jax.random.normal(kx, (16, input_size), jnp.float32)
    q16 = neural_network_forward(x16, w1, b1, w2, b2)
    jax.block_until_ready(q16)
    assert q16.shape == (16, actions_num)
    assert jnp.allclose(q16, ref_fwd(x16), atol=1e-4, rtol=1e-4)

    # bf16 compute path (recommended at large batch when x is stored in bf16).
    q16b = neural_network_forward(x16, w1, b1, w2, b2,
                                  compute_dtype=jnp.bfloat16)
    jax.block_until_ready(q16b)
    assert jnp.allclose(q16b, ref_fwd(x16), atol=8e-2, rtol=8e-2)

    # Multi-step grid with a ragged last block (no wrapper-side padding of x).
    x1k = jax.random.normal(jax.random.PRNGKey(1), (1000, input_size), jnp.float32)
    q1k = neural_network_forward(x1k, w1, b1, w2, b2, batch_tile=256)
    jax.block_until_ready(q1k)
    assert q1k.shape == (1000, actions_num)
    assert jnp.allclose(q1k, ref_fwd(x1k), atol=1e-4, rtol=1e-4)

    # Odd batch: fold degenerates to F=1, semantics unchanged.
    x3 = jax.random.normal(jax.random.PRNGKey(2), (3, input_size), jnp.float32)
    q3 = neural_network_forward(x3, w1, b1, w2, b2)
    jax.block_until_ready(q3)
    assert jnp.allclose(q3, ref_fwd(x3), atol=1e-4, rtol=1e-4)

    print("KERNEL_OK")
</pallas_src>

<mosaic_0001>
module attributes {stable_mosaic.version = 11 : i64} {
  func.func @_mlp_kernel(%arg0: i32, %arg1: memref<2x256xf32, #tpu.memory_space<vmem>>, %arg2: memref<256x240xf32, #tpu.memory_space<vmem>>, %arg3: memref<1x240xf32, #tpu.memory_space<vmem>>, %arg4: memref<240x32xf32, #tpu.memory_space<vmem>>, %arg5: memref<1x32xf32, #tpu.memory_space<vmem>>, %arg6: memref<2x32xf32, #tpu.memory_space<vmem>>) attributes {dimension_semantics = [#tpu.dimension_semantics<parallel>], iteration_bounds = array<i64: 1>, scalar_prefetch = 0 : i64, scratch_operands = 0 : i64, tpu.core_type = #tpu.core_type<tc>, window_params = [{transform_indices = @transform_0, window_bounds = array<i64: 2, 256>}, {pipeline_mode = #tpu.pipeline_mode<synchronous>, transform_indices = @transform_1, window_bounds = array<i64: 256, 240>}, {pipeline_mode = #tpu.pipeline_mode<synchronous>, transform_indices = @transform_2, window_bounds = array<i64: 1, 240>}, {pipeline_mode = #tpu.pipeline_mode<synchronous>, transform_indices = @transform_3, window_bounds = array<i64: 240, 32>}, {pipeline_mode = #tpu.pipeline_mode<synchronous>, transform_indices = @transform_4, window_bounds = array<i64: 1, 32>}, {transform_indices = @transform_5, window_bounds = array<i64: 2, 32>}]} {
    %c0 = arith.constant 0 : index
    %c0_0 = arith.constant 0 : index
    %0 = vector.load %arg1[%c0, %c0_0] : memref<2x256xf32, #tpu.memory_space<vmem>>, vector<2x256xf32>
    %c0_1 = arith.constant 0 : index
    %c0_2 = arith.constant 0 : index
    %1 = vector.load %arg2[%c0_1, %c0_2] : memref<256x240xf32, #tpu.memory_space<vmem>>, vector<256x240xf32>
    %cst = arith.constant dense<0.000000e+00> : vector<2x240xf32>
    %2 = tpu.matmul %0, %1, %cst {dimension_numbers = #tpu.dot_dimension_numbers<[1], [0], [0], [1], [0, 0, 1, 1], [], []>} : vector<2x256xf32>, vector<256x240xf32>, vector<2x240xf32> -> vector<2x240xf32>
    %c0_3 = arith.constant 0 : index
    %c0_4 = arith.constant 0 : index
    %3 = vector.load %arg3[%c0_3, %c0_4] : memref<1x240xf32, #tpu.memory_space<vmem>>, vector<1x240xf32>
    %4 = vector.broadcast %3 : vector<1x240xf32> to vector<2x240xf32>
    %5 = arith.addf %2, %4 : vector<2x240xf32>
    %cst_5 = arith.constant 0.000000e+00 : f32
    %6 = vector.broadcast %cst_5 : f32 to vector<2x240xf32>
    %7 = arith.maximumf %5, %6 : vector<2x240xf32>
    %c0_6 = arith.constant 0 : index
    %c0_7 = arith.constant 0 : index
    %8 = vector.load %arg4[%c0_6, %c0_7] : memref<240x32xf32, #tpu.memory_space<vmem>>, vector<240x32xf32>
    %cst_8 = arith.constant dense<0.000000e+00> : vector<2x32xf32>
    %9 = tpu.matmul %7, %8, %cst_8 {dimension_numbers = #tpu.dot_dimension_numbers<[1], [0], [0], [1], [0, 0, 1, 1], [], []>} : vector<2x240xf32>, vector<240x32xf32>, vector<2x32xf32> -> vector<2x32xf32>
    %c0_9 = arith.constant 0 : index
    %c0_10 = arith.constant 0 : index
    %10 = vector.load %arg5[%c0_9, %c0_10] : memref<1x32xf32, #tpu.memory_space<vmem>>, vector<1x32xf32>
    %11 = vector.broadcast %10 : vector<1x32xf32> to vector<2x32xf32>
    %12 = arith.addf %9, %11 : vector<2x32xf32>
    %c0_11 = arith.constant 0 : index
    %c0_12 = arith.constant 0 : index
    %13 = vector.load %arg6[%c0_11, %c0_12] : memref<2x32xf32, #tpu.memory_space<vmem>>, vector<2x32xf32>
    tpu.vector_store %arg6[%c0_11, %c0_12], %12 {strides = array<i32>} : memref<2x32xf32, #tpu.memory_space<vmem>>, vector<2x32xf32>,
    return
  }
  func.func @transform_0(%arg0: i32) -> (i32, i32) {
    %c0_i32 = arith.constant 0 : i32
    %c0_i32_0 = arith.constant 0 : i32
    return %arg0, %c0_i32 : i32, i32
  }
  func.func @transform_1(%arg0: i32) -> (i32, i32) {
    %c0_i32 = arith.constant 0 : i32
    %c0_i32_0 = arith.constant 0 : i32
    %c0_i32_1 = arith.constant 0 : i32
    return %c0_i32, %c0_i32_0 : i32, i32
  }
  func.func @transform_2(%arg0: i32) -> (i32, i32) {
    %c0_i32 = arith.constant 0 : i32
    %c0_i32_0 = arith.constant 0 : i32
    %c0_i32_1 = arith.constant 0 : i32
    return %c0_i32, %c0_i32_0 : i32, i32
  }
  func.func @transform_3(%arg0: i32) -> (i32, i32) {
    %c0_i32 = arith.constant 0 : i32
    %c0_i32_0 = arith.constant 0 : i32
    %c0_i32_1 = arith.constant 0 : i32
    return %c0_i32, %c0_i32_0 : i32, i32
  }
  func.func @transform_4(%arg0: i32) -> (i32, i32) {
    %c0_i32 = arith.constant 0 : i32
    %c0_i32_0 = arith.constant 0 : i32
    %c0_i32_1 = arith.constant 0 : i32
    return %c0_i32, %c0_i32_0 : i32, i32
  }
  func.func @transform_5(%arg0: i32) -> (i32, i32) {
    %c0_i32 = arith.constant 0 : i32
    %c0_i32_0 = arith.constant 0 : i32
    return %arg0, %c0_i32 : i32, i32
  }
}

</mosaic_0001>

<bundles_post_ra>
// kernel: tpu_custom_call.1
= control target key start
LH: loop header
LB: loop body
LE: loop exit
PB: predicated region body
PF: predicated region fallthrough
CT: control target
= control target key end

     0   :  { %v447_v7 = vmov 0.0|0.0   ;;  %s802_s0 = inlined_call_operand.vmem [shape: f32[2,256], index: 0, kind: input, shape index: {}]   ;;  %s803_s1 = inlined_call_operand.vmem [shape: f32[256,240], index: 1, kind: input, shape index: {}]   ;;  %s804_s2 = inlined_call_operand.vmem [shape: f32[1,240], index: 2, kind: input, shape index: {}]   ;;  %s805_s3 = inlined_call_operand.vmem [shape: f32[240,32], index: 3, kind: input, shape index: {}]   ;;  %s806_s4 = inlined_call_operand.vmem [shape: f32[1,32], index: 4, kind: input, shape index: {}]   ;;  %s807_s5 = inlined_call_operand.hbm [shape: f32[2,32], index: 5, kind: output, shape index: {}]  }
   0x1   :  { %v23_v0 = vld [vmem:[%s803_s1 + $0x8] sm:$0xff]  ;;  %v25_v1 = vld [vmem:[%s803_s1 + $0x18] sm:$0xff]  ;;  %v22_v2 = vld [vmem:[%s803_s1] sm:$0xff]  ;;  %376 = vmatprep.subr.bf16.mxu1 %v447_v7 }
   0x2   :  { %v312_v3 = vpack.c.bf16 %v25_v1, %v23_v0  ;;  %v24_v4 = vld [vmem:[%s803_s1 + $0x10] sm:$0xff]  ;;  %v27_v5 = vld [vmem:[%s803_s1 + $0x28] sm:$0xff]  ;;  %v29_v6 = vld [vmem:[%s803_s1 + $0x38] sm:$0xff] }
   0x3   :  { %v314_v8 = vpack.c.bf16 %v24_v4, %v22_v2  ;;  %v316_v9 = vpack.c.bf16 %v29_v6, %v27_v5  ;;  %v26_v10 = vld [vmem:[%s803_s1 + $0x20] sm:$0xff]  ;;  %v28_v11 = vld [vmem:[%s803_s1 + $0x30] sm:$0xff]  ;;  %v31_v12 = vld [vmem:[%s803_s1 + $0x48] sm:$0xff] }
   0x4   :  { %313 = vmatprep.subr.bf16.mxu0 %v312_v3  ;;  %v33_v13 = vld [vmem:[%s803_s1 + $0x58] sm:$0xff]  ;;  %v318_v14 = vpack.c.bf16 %v28_v11, %v26_v10  ;;  %v30_v16 = vld [vmem:[%s803_s1 + $0x40] sm:$0xff]  ;;  %v32_v17 = vld [vmem:[%s803_s1 + $0x50] sm:$0xff] }
   0x5   :  { %315 = vmatpush1.bf16.msra.mxu0 %v314_v8  ;;  %v320_v15 = vpack.c.bf16 %v33_v13, %v31_v12  ;;  %v35_v18 = vld [vmem:[%s803_s1 + $0x68] sm:$0xff]  ;;  %v37_v19 = vld [vmem:[%s803_s1 + $0x78] sm:$0xff]  ;;  %v322_v20 = vpack.c.bf16 %v32_v17, %v30_v16  ;;  %v34_v22 = vld [vmem:[%s803_s1 + $0x60] sm:$0xff] }
   0x6   :  { %317 = vmatprep.subr.bf16.mxu0 %v316_v9  ;;  %v324_v21 = vpack.c.bf16 %v37_v19, %v35_v18  ;;  %v36_v23 = vld [vmem:[%s803_s1 + $0x70] sm:$0xff]  ;;  %v39_v24 = vld [vmem:[%s803_s1 + $0x88] sm:$0xff]  ;;  %v41_v25 = vld [vmem:[%s803_s1 + $0x98] sm:$0xff] }
   0x7   :  { %v326_v26 = vpack.c.bf16 %v36_v23, %v34_v22  ;;  %v328_v27 = vpack.c.bf16 %v41_v25, %v39_v24  ;;  %v38_v28 = vld [vmem:[%s803_s1 + $0x80] sm:$0xff]  ;;  %v40_v29 = vld [vmem:[%s803_s1 + $0x90] sm:$0xff]  ;;  %v43_v30 = vld [vmem:[%s803_s1 + $0xa8] sm:$0xff] }
   0x8   :  { %v45_v31 = vld [vmem:[%s803_s1 + $0xb8] sm:$0xff]  ;;  %v330_v32 = vpack.c.bf16 %v40_v29, %v38_v28  ;;  %v42_v34 = vld [vmem:[%s803_s1 + $0xa0] sm:$0xff]  ;;  %v44_v35 = vld [vmem:[%s803_s1 + $0xb0] sm:$0xff] }
   0x9   :  { %319 = vmatpush1.bf16.msra.mxu0 %v318_v14  ;;  %v332_v33 = vpack.c.bf16 %v45_v31, %v43_v30  ;;  %v47_v36 = vld [vmem:[%s803_s1 + $0xc8] sm:$0xff]  ;;  %v49_v37 = vld [vmem:[%s803_s1 + $0xd8] sm:$0xff]  ;;  %v334_v38 = vpack.c.bf16 %v44_v35, %v42_v34  ;;  %v46_v39 = vld [vmem:[%s803_s1 + $0xc0] sm:$0xff] }
   0xa   :  { %321 = vmatprep.subr.bf16.mxu0 %v320_v15  ;;  %v48_v40 = vld [vmem:[%s803_s1 + $0xd0] sm:$0xff]  ;;  %v51_v41 = vld [vmem:[%s803_s1 + $0xe8] sm:$0xff]  ;;  %v336_v42 = vpack.c.bf16 %v49_v37, %v47_v36  ;;  %v53_v43 = vld [vmem:[%s803_s1 + $0xf8] sm:$0xff] }
   0xb   :  { %v573_v44 = vld.sshfl [vmem:[%s802_s0] sm:$0x33 pattern:$0x76325410]  ;;  %v183_v47 = vld [vmem:[%s805_s3 + $0x8] sm:$0xff]  ;;  %v184_v48 = vld [vmem:[%s805_s3 + $0x10] sm:$0xff]  ;;  %v338_v51 = vpack.c.bf16 %v48_v40, %v46_v39  ;;  %v340_v52 = vpack.c.bf16 %v53_v43, %v51_v41 }
   0xc   :  { %v182_v45 = vld [vmem:[%s805_s3] sm:$0xff]  ;;  %v106_v46 = vcombine.high %v573_v44, %v573_v44  ;;  %v185_v49 = vld [vmem:[%s805_s3 + $0x18] sm:$0xff]  ;;  %v52_v54 = vld [vmem:[%s803_s1 + $0xf0] sm:$0xff] }
   0xd   :  { %323 = vmatpush1.bf16.msra.mxu0 %v322_v20  ;;  %v377_v50 = vpack.c.bf16 %v183_v47, %v182_v45  ;;  %v50_v53 = vld [vmem:[%s803_s1 + $0xe0] sm:$0xff]  ;;  %v55_v55 = vld [vmem:[%s803_s1 + $0x108] sm:$0xff]  ;;  %v380_v56 = vpack.c.bf16 %v185_v49, %v184_v48  ;;  %v57_v57 = vld [vmem:[%s803_s1 + $0x118] sm:$0xff] }
   0xe   :  { %325 = vmatprep.subr.bf16.mxu0 %v324_v21  ;;  %173 = vmatprep.mubr.f32.mxu0 %v106_v46  ;;  %v186_v58 = vld [vmem:[%s805_s3 + $0x20] sm:$0xff]  ;;  %v187_v59 = vld [vmem:[%s805_s3 + $0x28] sm:$0xff]  ;;  %v342_v60 = vpack.c.bf16 %v52_v54, %v50_v53  ;;  %v344_v62 = vpack.c.bf16 %v57_v57, %v55_v55  ;;  %v56_v63 = vld [vmem:[%s803_s1 + $0x110] sm:$0xff] }
   0xf   :  { %378 = vmatpush1.bf16.msra.mxu1 %v377_v50  ;;  %v54_v61 = vld [vmem:[%s803_s1 + $0x100] sm:$0xff]  ;;  %v59_v0 = vld [vmem:[%s803_s1 + $0x128] sm:$0xff]  ;;  %v61_v1 = vld [vmem:[%s803_s1 + $0x138] sm:$0xff]  ;;  %v383_v2 = vpack.c.bf16 %v187_v59, %v186_v58 }
  0x10   :  { %379 = vmatprep.subr.bf16.mxu1 %v447_v7  ;;  %v188_v3 = vld [vmem:[%s805_s3 + $0x30] sm:$0xff]  ;;  %v189_v4 = vld [vmem:[%s805_s3 + $0x38] sm:$0xff] }
  0x11   :  { %327 = vmatpush1.bf16.msra.mxu0 %v326_v26 }
  0x12   :  { %329 = vmatprep.subr.bf16.mxu0 %v328_v27 }
  0x13   :  { %381 = vmatpush1.bf16.msra.mxu1 %v380_v56 }
  0x14   :  { %382 = vmatprep.subr.bf16.mxu1 %v447_v7 }
  0x15   :  { %331 = vmatpush1.bf16.msra.mxu0 %v330_v32 }
  0x16   :  { %333 = vmatprep.subr.bf16.mxu0 %v332_v33 }
  0x19   :  { %335 = vmatpush1.bf16.msra.mxu0 %v334_v38 }
  0x1a   :  { %337 = vmatprep.subr.bf16.mxu0 %v336_v42 }
  0x1d   :  { %339 = vmatpush1.bf16.msra.mxu0 %v338_v51 }
  0x1e   :  { %341 = vmatprep.subr.bf16.mxu0 %v340_v52 }
  0x1f   :  { %10 = vsyncpa [#allocation3], 0  ;;  %v346_v5 = vpack.c.bf16 %v56_v63, %v54_v61  ;;  %v348_v6 = vpack.c.bf16 %v61_v1, %v59_v0  ;;  %v58_v8 = vld [vmem:[%s803_s1 + $0x120] sm:$0xff]  ;;  %v60_v9 = vld [vmem:[%s803_s1 + $0x130] sm:$0xff]  ;;  %384 = vmatpush1.bf16.msra.mxu1 %v383_v2  ;;  %v386_v11 = vpack.c.bf16 %v189_v4, %v188_v3  ;;  %vm219_vm0 = vcmask 916480   ;;  %s448_s30 = smov [#allocation2]  }
  0x20   :  { %v63_v10 = vld [vmem:[%s803_s1 + $0x148] sm:$0xff]  ;;  %v65_v12 = vld [vmem:[%s803_s1 + $0x158] sm:$0xff]  ;;  %385 = vmatprep.subr.bf16.mxu1 %v447_v7  ;;  %v190_v13 = vld [vmem:[%s805_s3 + $0x40] sm:$0xff]  ;;  %v350_v15 = vpack.c.bf16 %v60_v9, %v58_v8  ;;  %s301_s6 = sshll.u32 %s448_s30, 4  ;;  %vm293_vm1 = vcmask 254976   ;;  %s302_s6 = int_to_ptr.vmem [resolvable:$true] %s301_s6 }
  0x21   :  { %343 = vmatpush1.bf16.msra.mxu0 %v342_v60  ;;  %v191_v14 = vld [vmem:[%s805_s3 + $0x48] sm:$0xff]  ;;  %v352_v16 = vpack.c.bf16 %v65_v12, %v63_v10  ;;  %v62_v17 = vld [vmem:[%s803_s1 + $0x140] sm:$0xff]  ;;  %v64_v18 = vld [vmem:[%s803_s1 + $0x150] sm:$0xff]  ;;  %p428_p1 = scmp.lt.s32.totalorder %s302_s6, %s302_s6 }
  0x22   :  { %345 = vmatprep.subr.bf16.mxu0 %v344_v62  ;;  %v67_v19 = vld [vmem:[%s803_s1 + $0x168] sm:$0xff]  ;;  %v389_v20 = vpack.c.bf16 %v191_v14, %v190_v13  ;;  %v69_v21 = vld [vmem:[%s803_s1 + $0x178] sm:$0xff]  ;;  %v192_v22 = vld [vmem:[%s805_s3 + $0x50] sm:$0xff]  ;;  %v354_v24 = vpack.c.bf16 %v64_v18, %v62_v17  ;;  %v88_v18 = vlaneseq }
  0x23   :  { %387 = vmatpush1.bf16.msra.mxu1 %v386_v11  ;;  %v193_v23 = vld [vmem:[%s805_s3 + $0x58] sm:$0xff]  ;;  %v356_v25 = vpack.c.bf16 %v69_v21, %v67_v19  ;;  %v66_v26 = vld [vmem:[%s803_s1 + $0x160] sm:$0xff]  ;;  %v68_v27 = vld [vmem:[%s803_s1 + $0x170] sm:$0xff] }
  0x24   :  { %388 = vmatprep.subr.bf16.mxu1 %v447_v7  ;;  %v71_v28 = vld [vmem:[%s803_s1 + $0x188] sm:$0xff]  ;;  %v392_v29 = vpack.c.bf16 %v193_v23, %v192_v22  ;;  %v73_v30 = vld [vmem:[%s803_s1 + $0x198] sm:$0xff]  ;;  %v194_v31 = vld [vmem:[%s805_s3 + $0x60] sm:$0xff]  ;;  %v358_v33 = vpack.c.bf16 %v68_v27, %v66_v26  ;;  %v89_v19 = vshrl.u32 %v88_v18, 7 }
  0x25   :  { %347 = vmatpush1.bf16.msra.mxu0 %v346_v5  ;;  %v195_v32 = vld [vmem:[%s805_s3 + $0x68] sm:$0xff]  ;;  %v360_v34 = vpack.c.bf16 %v73_v30, %v71_v28  ;;  %v70_v35 = vld [vmem:[%s803_s1 + $0x180] sm:$0xff]  ;;  %v72_v36 = vld [vmem:[%s803_s1 + $0x190] sm:$0xff] }
  0x26   :  { %349 = vmatprep.subr.bf16.mxu0 %v348_v6  ;;  %v75_v37 = vld [vmem:[%s803_s1 + $0x1a8] sm:$0xff]  ;;  %v395_v38 = vpack.c.bf16 %v195_v32, %v194_v31  ;;  %v77_v39 = vld [vmem:[%s803_s1 + $0x1b8] sm:$0xff]  ;;  %v196_v40 = vld [vmem:[%s805_s3 + $0x70] sm:$0xff]  ;;  %v362_v42 = vpack.c.bf16 %v72_v36, %v70_v35  ;;  %v94_v22 = vsub.s32 1, %v89_v19 }
  0x27   :  { %390 = vmatpush1.bf16.msra.mxu1 %v389_v20  ;;  %v197_v41 = vld [vmem:[%s805_s3 + $0x78] sm:$0xff]  ;;  %v364_v43 = vpack.c.bf16 %v77_v39, %v75_v37  ;;  %v74_v45 = vld [vmem:[%s803_s1 + $0x1a0] sm:$0xff]  ;;  %v76_v46 = vld [vmem:[%s803_s1 + $0x1b0] sm:$0xff]  ;;  %v90_v20 = vsub.s32 0, %v89_v19 }
  0x28   :  { %391 = vmatprep.subr.bf16.mxu1 %v447_v7  ;;  %v79_v47 = vld [vmem:[%s803_s1 + $0x1c8] sm:$0xff]  ;;  %v398_v48 = vpack.c.bf16 %v197_v41, %v196_v40  ;;  %v81_v49 = vld [vmem:[%s803_s1 + $0x1d8] sm:$0xff]  ;;  %v198_v50 = vld [vmem:[%s805_s3 + $0x80] sm:$0xff]  ;;  %v366_v52 = vpack.c.bf16 %v76_v46, %v74_v45 }
  0x29   :  { %351 = vmatpush1.bf16.msra.mxu0 %v350_v15  ;;  %v199_v51 = vld [vmem:[%s805_s3 + $0x88] sm:$0xff]  ;;  %v368_v53 = vpack.c.bf16 %v81_v49, %v79_v47  ;;  %v78_v54 = vld [vmem:[%s803_s1 + $0x1c0] sm:$0xff]  ;;  %v80_v55 = vld [vmem:[%s803_s1 + $0x1d0] sm:$0xff] }
  0x2a   :  { %353 = vmatprep.subr.bf16.mxu0 %v352_v16  ;;  %v83_v56 = vld [vmem:[%s803_s1 + $0x1e8] sm:$0xff]  ;;  %v401_v57 = vpack.c.bf16 %v199_v51, %v198_v50  ;;  %v85_v58 = vld [vmem:[%s803_s1 + $0x1f8] sm:$0xff]  ;;  %v200_v59 = vld [vmem:[%s805_s3 + $0x90] sm:$0xff]  ;;  %v370_v61 = vpack.c.bf16 %v80_v55, %v78_v54 }
  0x2b   :  { %393 = vmatpush1.bf16.msra.mxu1 %v392_v29  ;;  %v201_v60 = vld [vmem:[%s805_s3 + $0x98] sm:$0xff]  ;;  %v372_v62 = vpack.c.bf16 %v85_v58, %v83_v56  ;;  %v82_v63 = vld [vmem:[%s803_s1 + $0x1e0] sm:$0xff]  ;;  %v84_v0 = vld [vmem:[%s803_s1 + $0x1f0] sm:$0xff] }
  0x2c   :  { %394 = vmatprep.subr.bf16.mxu1 %v447_v7  ;;  %v404_v1 = vpack.c.bf16 %v201_v60, %v200_v59  ;;  %v202_v2 = vld [vmem:[%s805_s3 + $0xa0] sm:$0xff]  ;;  %v203_v3 = vld [vmem:[%s805_s3 + $0xa8] sm:$0xff]  ;;  %v374_v4 = vpack.c.bf16 %v84_v0, %v82_v63  ;;  %v204_v6 = vld [vmem:[%s805_s3 + $0xb0] sm:$0xff] }
  0x2d   :  { %355 = vmatpush1.bf16.msra.mxu0 %v354_v24  ;;  %v407_v5 = vpack.c.bf16 %v203_v3, %v202_v2  ;;  %v205_v8 = vld [vmem:[%s805_s3 + $0xb8] sm:$0xff]  ;;  %v206_v10 = vld [vmem:[%s805_s3 + $0xc0] sm:$0xff]  ;;  %v207_v11 = vld [vmem:[%s805_s3 + $0xc8] sm:$0xff] }
  0x2e   :  { %357 = vmatprep.subr.bf16.mxu0 %v356_v25  ;;  %v410_v9 = vpack.c.bf16 %v205_v8, %v204_v6  ;;  %v413_v12 = vpack.c.bf16 %v207_v11, %v206_v10  ;;  %v208_v13 = vld [vmem:[%s805_s3 + $0xd0] sm:$0xff]  ;;  %v209_v14 = vld [vmem:[%s805_s3 + $0xd8] sm:$0xff]  ;;  %v211_v16 = vld [vmem:[%s805_s3 + $0xe8] sm:$0xff] }
  0x2f   :  { %396 = vmatpush1.bf16.msra.mxu1 %v395_v38  ;;  %v416_v15 = vpack.c.bf16 %v209_v14, %v208_v13  ;;  %v86_v21 = vld [vmem:[%s804_s2] sm:$0x3]  ;;  %s423_s2 = scalar_lea.vmem %s302_s6, 32 }
  0x30   :  { %397 = vmatprep.subr.bf16.mxu1 %v447_v7  ;;  %v91_v23 = vrot.slane %v86_v21, %v90_v20  ;;  %v310_v30 = vld [vmem:[%s806_s4] ss:$0 sm:$0xff]  ;;  %p424_p0 = scmp.ne.s32.totalorder %s302_s6, %s423_s2  ;;  %p429_p2 = scmp.lt.s32.totalorder %s423_s2, %s423_s2 }
  0x31   :  { %359 = vmatpush1.bf16.msra.mxu0 %v358_v33 }
  0x32   :  { %361 = vmatprep.subr.bf16.mxu0 %v360_v34  ;;  %p430_p3 = por %p429_p2, %p428_p1 }
  0x33   :  { %399 = vmatpush1.bf16.msra.mxu1 %v398_v48 }
  0x34   :  { %400 = vmatprep.subr.bf16.mxu1 %v447_v7  ;;  %p431_p4 = pnand %p430_p3, %p424_p0 }
  0x35   :  { %363 = vmatpush1.bf16.msra.mxu0 %v362_v42 }
  0x36   :  { %365 = vmatprep.subr.bf16.mxu0 %v364_v43 }
  0x37   :  { %402 = vmatpush1.bf16.msra.mxu1 %v401_v57 }
  0x38   :  { %403 = vmatprep.subr.bf16.mxu1 %v447_v7 }
  0x39   :  { %367 = vmatpush1.bf16.msra.mxu0 %v366_v52 }
  0x3a   :  { %369 = vmatprep.subr.bf16.mxu0 %v368_v53 }
  0x3b   :  { %405 = vmatpush1.bf16.msra.mxu1 %v404_v1 }
  0x3c   :  { %406 = vmatprep.subr.bf16.mxu1 %v447_v7 }
  0x3d   :  { %371 = vmatpush1.bf16.msra.mxu0 %v370_v61 }
  0x3e   :  { %373 = vmatprep.subr.bf16.mxu0 %v372_v62 }
  0x3f   :  { %408 = vmatpush1.bf16.msra.mxu1 %v407_v5 }
  0x40   :  { %409 = vmatprep.subr.bf16.mxu1 %v447_v7 }
  0x41   :  { %375 = vmatpush1.bf16.msra.mxu0 %v374_v4 }
  0x43   :  { %411 = vmatpush1.bf16.msra.mxu1 %v410_v9 }
  0x44   :  { %174 = vmatmul.mubr.f32.vlgmr.msra.gmra.mrb[0].mxu0 %v573_v44  ;;  %412 = vmatprep.subr.bf16.mxu1 %v447_v7  ;;  %v210_v44 = vld [vmem:[%s805_s3 + $0xe0] sm:$0xff] }
  0x45   :  { %v419_v17 = vpack.c.bf16 %v211_v16, %v210_v44 }
  0x47   :  { %414 = vmatpush1.bf16.msra.mxu1 %v413_v12 }
  0x48   :  { %415 = vmatprep.subr.bf16.mxu1 %v447_v7 }
  0x4b   :  { %417 = vmatpush1.bf16.msra.mxu1 %v416_v15 }
  0x4c   :  { %418 = vmatprep.subr.bf16.mxu1 %v447_v7  ;;  %v95_v7 = vrot.slane %v86_v21, %v94_v22 }
  0x4f   :  { %420 = vmatpush1.bf16.msra.mxu1 %v419_v17 }
 0x117   :  { %v175_v24 = vpop.f32.mrb[0].mxu0 }
 0x118   :  { %v176_v25 = vadd.f32 %v175_v24, %v91_v23  ;;  %v177_v26 = vpop.f32.mrb[1].mxu0 }
 0x119   :  { %v178_v27 = vadd.f32 %v177_v26, %v95_v7 }
 0x11a   :  { %v180_v29 = vmax.f32 %v176_v25, 0.0 }
 0x11b   :  { %v181_v28 = vmax.f32 %v178_v27, 0.0 }
 0x11d   :  { %311 = vmatprep.mubr.msk.f32.mxu1 %vm219_vm0, %v181_v28 }
 0x11e   :  { %288 = vmatmul.mubr.f32.vlgmr.msra.gmra.mrb[0].mxu1 %v180_v29 }
 0x1f1   :  { %v289_v31 = vpop.f32.mrb[0].mxu1 }
 0x1f2   :  { %v290_v32 = vadd.f32 %v310_v30, %v289_v31  ;;  %v291_v33 = vpop.f32.mrb[1].mxu1 }
 0x1f4   :  { %294 = vst.msk [vmem:[#allocation2] sm:$0x3] %vm293_vm1, %v290_v32 }
 0x1f5   :  { %434 = shalt.err (!%p431_p4)
}
 0x1f6   :  { %s435_s9 = scalar_lea.hbm %s807_s5, 32 }
 0x1f7   :  { %p436_p5 = scmp.ne.s32.totalorder %s807_s5, %s435_s9  ;;  %p439_p6 = scmp.lt.u32.totalorder %s435_s9, %s807_s5 }
 0x1f9   :  { %p441_p7 = pnand %p439_p6, %p436_p5 }
 0x1fb   :  { %444 = shalt.err (!%p441_p7)
}
 0x1fc   :  { %304 = dma.vmem_to_hbm [thread:$0]  %s302_s6, 32, %s807_s5, [#allocation3]  }
 0x1fd   :  { %445 = dma.done.wait [#allocation3], 32  }
 0x1fe   :  { %446 = vsyncadd [#allocation3], 4294967264 }
 0x1ff   :  { %308 = vsyncpa [#allocation3], 1 }

</bundles_post_ra>
